<compile_context>
chip_gen: v6e
topology: v6e:2x2x1
jax: 0.10.0
libtpu: 0.0.40
codegen_flags: <defaults>
</compile_context>

<pallas_src>
import functools

import jax
import jax.numpy as jnp
from jax.experimental import pallas as pl
from jax.experimental.pallas import tpu as pltpu


def _round_up(x, m):
    return (x + m - 1) // m * m


def _mlp_head_kernel(x_ref, w1_ref, b1_ref, w2_ref, b2_ref, o_ref):
    # fc1 (bf16 x bf16 -> f32 accum) + bias + ReLU in f32.
    h = jnp.dot(x_ref[...], w1_ref[...], preferred_element_type=jnp.float32)
    h = jnp.maximum(h + b1_ref[...], 0.0)
    # fc2: downcast activation to bf16 only for the MXU op, accumulate in f32.
    out = jnp.dot(h.astype(w2_ref.dtype), w2_ref[...],
                  preferred_element_type=jnp.float32)
    o_ref[...] = jnp.maximum(out + b2_ref[...], 0.0).astype(o_ref.dtype)


def _vmem_limit_bytes(tile_n, k_pad, h_pad):
    # Resident footprint: bf16 weights + biases + double-buffered bf16 x tile,
    # f32 fc1 intermediate, double-buffered f32 output tile.
    w_bytes = (k_pad * h_pad + h_pad * h_pad) * 2
    b_bytes = 2 * h_pad * 4
    x_bytes = 2 * tile_n * k_pad * 2
    h_bytes = tile_n * h_pad * 4
    o_bytes = 2 * tile_n * h_pad * 4
    need = w_bytes + b_bytes + x_bytes + h_bytes + o_bytes
    # 2x headroom, but never below the 32 MiB scoped default and never above
    # a safe cap for v7x's 64 MiB physical VMEM.
    return max(32 << 20, min(int(need * 2), 56 << 20))


@functools.partial(jax.jit, static_argnames=("tile_n",))
def roi_car_cls_rot_head_forward(x_nchw, w1, b1, w2, b2, *, tile_n=256):
    """x_nchw: (N, C, H, W) pooled ROI features.  w1: (K, hidden) (= torch
    fc1.weight.T), b1: (hidden,), w2: (hidden, hidden), b2: (hidden,).
    Returns (N, hidden) float32."""
    n = x_nchw.shape[0]
    k = x_nchw.shape[1] * x_nchw.shape[2] * x_nchw.shape[3]
    hidden = w1.shape[1]

    # Matches torch x.view(batch_size, -1) on NCHW (row-major flatten).
    x_flat = x_nchw.reshape(n, k)

    # --- Pad to TPU-friendly shapes (lane-dense, unmasked stores) ----------
    k_pad = _round_up(k, 128)
    h_pad = _round_up(hidden, 128)
    tile_n = min(tile_n, _round_up(n, 8))
    n_pad = _round_up(n, tile_n)

    x_p = jnp.zeros((n_pad, k_pad), jnp.float32).at[:n, :k].set(x_flat)
    w1_p = jnp.zeros((k_pad, h_pad), jnp.float32).at[:k, :hidden].set(w1)
    w2_p = jnp.zeros((h_pad, h_pad), jnp.float32).at[:hidden, :hidden].set(w2)
    b1_p = jnp.zeros((1, h_pad), jnp.float32).at[0, :hidden].set(b1)
    b2_p = jnp.zeros((1, h_pad), jnp.float32).at[0, :hidden].set(b2)

    # --- bf16 matmul operands (MXU-native); biases stay f32 ----------------
    x_bf = x_p.astype(jnp.bfloat16)
    w1_bf = w1_p.astype(jnp.bfloat16)
    w2_bf = w2_p.astype(jnp.bfloat16)

    grid = (n_pad // tile_n,)

    out_padded = pl.pallas_call(
        _mlp_head_kernel,
        out_shape=jax.ShapeDtypeStruct((n_pad, h_pad), jnp.float32),
        grid=grid,
        in_specs=[
            pl.BlockSpec((tile_n, k_pad), lambda i: (i, 0)),   # x tile (moves)
            pl.BlockSpec((k_pad, h_pad), lambda i: (0, 0)),    # w1 (resident)
            pl.BlockSpec((1, h_pad), lambda i: (0, 0)),        # b1 (resident)
            pl.BlockSpec((h_pad, h_pad), lambda i: (0, 0)),    # w2 (resident)
            pl.BlockSpec((1, h_pad), lambda i: (0, 0)),        # b2 (resident)
        ],
        out_specs=pl.BlockSpec((tile_n, h_pad), lambda i: (i, 0)),
        compiler_params=pltpu.CompilerParams(
            dimension_semantics=("parallel",),
            vmem_limit_bytes=_vmem_limit_bytes(tile_n, k_pad, h_pad),
        ),
    )(x_bf, w1_bf, b1_p, w2_bf, b2_p)

    return out_padded[:n, :hidden]


def xavier_fill(key, fan_in, fan_out):
    # Caffe2 XavierFill: uniform(-sqrt(3/fan_in), +sqrt(3/fan_in)).
    scale = jnp.sqrt(3.0 / fan_in)
    # Stored as (in_features, out_features) == torch weight.T
    return jax.random.uniform(key, (fan_in, fan_out), jnp.float32,
                              minval=-scale, maxval=scale)


if __name__ == "__main__":
    # Small synthetic config: cfg.CAR_CLS.MLP_HEAD_DIM -> 32,
    # cfg.CAR_CLS.ROI_XFORM_RESOLUTION -> 4, dim_in -> 4, num_rois -> 8.
    dim_in = 4
    roi_size = 4
    hidden_dim = 32
    num_rois = 8

    key = jax.random.PRNGKey(0)
    kx, kw1, kw2 = jax.random.split(key, 3)

    # Pretend these are the ROI-aligned features produced by roi_xform.
    x = jax.random.normal(kx, (num_rois, dim_in, roi_size, roi_size),
                          jnp.float32)

    in_dim = dim_in * roi_size ** 2
    w1 = xavier_fill(kw1, in_dim, hidden_dim)        # fc1 weight (transposed)
    b1 = jnp.zeros((hidden_dim,), jnp.float32)       # init.constant_(bias, 0)
    w2 = xavier_fill(kw2, hidden_dim, hidden_dim)    # fc2 weight (transposed)
    b2 = jnp.zeros((hidden_dim,), jnp.float32)

    out = roi_car_cls_rot_head_forward(x, w1, b1, w2, b2)
    out = jax.block_until_ready(out)
    assert out.shape == (num_rois, hidden_dim)

    # Reference with the same bf16 operand casts (tight tolerance).
    x_bf = x.reshape(num_rois, -1).astype(jnp.bfloat16)
    ref = jnp.maximum(
        jnp.dot(x_bf, w1.astype(jnp.bfloat16),
                preferred_element_type=jnp.float32) + b1, 0.0)
    ref = jnp.maximum(
        jnp.dot(ref.astype(jnp.bfloat16), w2.astype(jnp.bfloat16),
                preferred_element_type=jnp.float32) + b2, 0.0)
    assert jnp.allclose(out, ref, atol=1e-3, rtol=1e-3)

    # Loose sanity check against the full-f32 PyTorch-equivalent math.
    ref_f32 = jnp.maximum(x.reshape(num_rois, -1) @ w1 + b1, 0.0)
    ref_f32 = jnp.maximum(ref_f32 @ w2 + b2, 0.0)
    assert jnp.allclose(out, ref_f32, atol=5e-2, rtol=5e-2)

    print("KERNEL_OK")
</pallas_src>

<mosaic_0001>
module attributes {stable_mosaic.version = 11 : i64} {
  func.func @_mlp_head_kernel(%arg0: i32, %arg1: memref<8x128xbf16, #tpu.memory_space<vmem>>, %arg2: memref<128x128xbf16, #tpu.memory_space<vmem>>, %arg3: memref<1x128xf32, #tpu.memory_space<vmem>>, %arg4: memref<128x128xbf16, #tpu.memory_space<vmem>>, %arg5: memref<1x128xf32, #tpu.memory_space<vmem>>, %arg6: memref<8x128xf32, #tpu.memory_space<vmem>>) attributes {dimension_semantics = [#tpu.dimension_semantics<parallel>], iteration_bounds = array<i64: 1>, scalar_prefetch = 0 : i64, scratch_operands = 0 : i64, tpu.core_type = #tpu.core_type<tc>, window_params = [{transform_indices = @transform_0, window_bounds = array<i64: 8, 128>}, {pipeline_mode = #tpu.pipeline_mode<synchronous>, transform_indices = @transform_1, window_bounds = array<i64: 128, 128>}, {pipeline_mode = #tpu.pipeline_mode<synchronous>, transform_indices = @transform_2, window_bounds = array<i64: 1, 128>}, {pipeline_mode = #tpu.pipeline_mode<synchronous>, transform_indices = @transform_3, window_bounds = array<i64: 128, 128>}, {pipeline_mode = #tpu.pipeline_mode<synchronous>, transform_indices = @transform_4, window_bounds = array<i64: 1, 128>}, {transform_indices = @transform_5, window_bounds = array<i64: 8, 128>}]} {
    %c0 = arith.constant 0 : index
    %c0_0 = arith.constant 0 : index
    %0 = vector.load %arg1[%c0, %c0_0] : memref<8x128xbf16, #tpu.memory_space<vmem>>, vector<8x128xbf16>
    %c0_1 = arith.constant 0 : index
    %c0_2 = arith.constant 0 : index
    %1 = vector.load %arg2[%c0_1, %c0_2] : memref<128x128xbf16, #tpu.memory_space<vmem>>, vector<128x128xbf16>
    %cst = arith.constant dense<0.000000e+00> : vector<8x128xf32>
    %2 = tpu.matmul %0, %1, %cst {dimension_numbers = #tpu.dot_dimension_numbers<[1], [0], [0], [1], [0, 0, 1, 1], [], []>} : vector<8x128xbf16>, vector<128x128xbf16>, vector<8x128xf32> -> vector<8x128xf32>
    %c0_3 = arith.constant 0 : index
    %c0_4 = arith.constant 0 : index
    %3 = vector.load %arg3[%c0_3, %c0_4] : memref<1x128xf32, #tpu.memory_space<vmem>>, vector<1x128xf32>
    %4 = vector.broadcast %3 : vector<1x128xf32> to vector<8x128xf32>
    %5 = arith.addf %2, %4 : vector<8x128xf32>
    %cst_5 = arith.constant 0.000000e+00 : f32
    %6 = vector.broadcast %cst_5 : f32 to vector<8x128xf32>
    %7 = arith.maximumf %5, %6 : vector<8x128xf32>
    %8 = arith.truncf %7 : vector<8x128xf32> to vector<8x128xbf16>
    %c0_6 = arith.constant 0 : index
    %c0_7 = arith.constant 0 : index
    %9 = vector.load %arg4[%c0_6, %c0_7] : memref<128x128xbf16, #tpu.memory_space<vmem>>, vector<128x128xbf16>
    %cst_8 = arith.constant dense<0.000000e+00> : vector<8x128xf32>
    %10 = tpu.matmul %8, %9, %cst_8 {dimension_numbers = #tpu.dot_dimension_numbers<[1], [0], [0], [1], [0, 0, 1, 1], [], []>} : vector<8x128xbf16>, vector<128x128xbf16>, vector<8x128xf32> -> vector<8x128xf32>
    %c0_9 = arith.constant 0 : index
    %c0_10 = arith.constant 0 : index
    %11 = vector.load %arg5[%c0_9, %c0_10] : memref<1x128xf32, #tpu.memory_space<vmem>>, vector<1x128xf32>
    %12 = vector.broadcast %11 : vector<1x128xf32> to vector<8x128xf32>
    %13 = arith.addf %10, %12 : vector<8x128xf32>
    %cst_11 = arith.constant 0.000000e+00 : f32
    %14 = vector.broadcast %cst_11 : f32 to vector<8x128xf32>
    %15 = arith.maximumf %13, %14 : vector<8x128xf32>
    %c0_12 = arith.constant 0 : index
    %c0_13 = arith.constant 0 : index
    %16 = vector.load %arg6[%c0_12, %c0_13] : memref<8x128xf32, #tpu.memory_space<vmem>>, vector<8x128xf32>
    tpu.vector_store %arg6[%c0_12, %c0_13], %15 {strides = array<i32>} : memref<8x128xf32, #tpu.memory_space<vmem>>, vector<8x128xf32>,
    return
  }
  func.func @transform_0(%arg0: i32) -> (i32, i32) {
    %c0_i32 = arith.constant 0 : i32
    %c0_i32_0 = arith.constant 0 : i32
    return %arg0, %c0_i32 : i32, i32
  }
  func.func @transform_1(%arg0: i32) -> (i32, i32) {
    %c0_i32 = arith.constant 0 : i32
    %c0_i32_0 = arith.constant 0 : i32
    %c0_i32_1 = arith.constant 0 : i32
    return %c0_i32, %c0_i32_0 : i32, i32
  }
  func.func @transform_2(%arg0: i32) -> (i32, i32) {
    %c0_i32 = arith.constant 0 : i32
    %c0_i32_0 = arith.constant 0 : i32
    %c0_i32_1 = arith.constant 0 : i32
    return %c0_i32, %c0_i32_0 : i32, i32
  }
  func.func @transform_3(%arg0: i32) -> (i32, i32) {
    %c0_i32 = arith.constant 0 : i32
    %c0_i32_0 = arith.constant 0 : i32
    %c0_i32_1 = arith.constant 0 : i32
    return %c0_i32, %c0_i32_0 : i32, i32
  }
  func.func @transform_4(%arg0: i32) -> (i32, i32) {
    %c0_i32 = arith.constant 0 : i32
    %c0_i32_0 = arith.constant 0 : i32
    %c0_i32_1 = arith.constant 0 : i32
    return %c0_i32, %c0_i32_0 : i32, i32
  }
  func.func @transform_5(%arg0: i32) -> (i32, i32) {
    %c0_i32 = arith.constant 0 : i32
    %c0_i32_0 = arith.constant 0 : i32
    return %arg0, %c0_i32 : i32, i32
  }
}

</mosaic_0001>

<bundles_post_ra>
// kernel: roi_car_cls_rot_head_forward.1
= control target key start
LH: loop header
LB: loop body
LE: loop exit
PB: predicated region body
PF: predicated region fallthrough
CT: control target
= control target key end

     0   :  { %v380_v1 = vmov 0.0   ;;  %vm381_vm0 = vmmov 0   ;;  %s473_s0 = inlined_call_operand.vmem [shape: bf16[8,128], index: 0, kind: input, shape index: {}]   ;;  %s474_s1 = inlined_call_operand.vmem [shape: bf16[128,128], index: 1, kind: input, shape index: {}]   ;;  %s475_s2 = inlined_call_operand.vmem [shape: f32[1,128], index: 2, kind: input, shape index: {}]   ;;  %s476_s3 = inlined_call_operand.vmem [shape: bf16[128,128], index: 3, kind: input, shape index: {}]   ;;  %s477_s4 = inlined_call_operand.vmem [shape: f32[1,128], index: 4, kind: input, shape index: {}]   ;;  %s478_s5 = inlined_call_operand.hbm [shape: f32[8,128], index: 5, kind: output, shape index: {}]  }
   0x1   :  { %v342_v0 = vld [vmem:[%s474_s1 + $0x38] sm:$0xff]   ;;  %299 = vmatprep.subr.bf16.mxu0 %v380_v1  ;;  %319 = vmatprep.subr.bf16.mxu1 %v380_v1  ;;  %v343_v2 = vld [vmem:[%s474_s1 + $0x30] sm:$0xff]   ;;  %v344_v3 = vld [vmem:[%s474_s1 + $0x28] sm:$0xff]  }
   0x2   :  { %300 = vmatpush3.bf16.msra.mxu0 %v342_v0  ;;  %315 = vmatprep.mubr.msk.bf16.mxu0 %vm381_vm0, %v380_v1  ;;  %v350_v4 = vld [vmem:[%s476_s3 + $0x38] sm:$0xff]   ;;  %v345_v5 = vld [vmem:[%s474_s1 + $0x20] sm:$0xff]   ;;  %v351_v6 = vld [vmem:[%s476_s3 + $0x30] sm:$0xff]  }
   0x3   :  { %301 = vmatprep.subr.bf16.mxu0 %v380_v1  ;;  %335 = vmatprep.mubr.msk.bf16.mxu1 %vm381_vm0, %v380_v1  ;;  %v346_v7 = vld [vmem:[%s474_s1 + $0x18] sm:$0xff]   ;;  %v352_v8 = vld [vmem:[%s476_s3 + $0x28] sm:$0xff]  }
   0x4   :  { %320 = vmatpush3.bf16.msra.mxu1 %v350_v4 }
   0x5   :  { %321 = vmatprep.subr.bf16.mxu1 %v380_v1 }
   0x6   :  { %302 = vmatpush3.bf16.msra.mxu0 %v343_v2 }
   0x7   :  { %303 = vmatprep.subr.bf16.mxu0 %v380_v1 }
   0x8   :  { %322 = vmatpush3.bf16.msra.mxu1 %v351_v6 }
   0x9   :  { %323 = vmatprep.subr.bf16.mxu1 %v380_v1 }
   0xa   :  { %304 = vmatpush3.bf16.msra.mxu0 %v344_v3 }
   0xb   :  { %305 = vmatprep.subr.bf16.mxu0 %v380_v1 }
   0xe   :  { %306 = vmatpush3.bf16.msra.mxu0 %v345_v5 }
   0xf   :  { %307 = vmatprep.subr.bf16.mxu0 %v380_v1 }
  0x10   :  { %10 = vsyncpa [#allocation3], 0  ;;  %v347_v9 = vld [vmem:[%s474_s1 + $0x10] sm:$0xff]   ;;  %324 = vmatpush3.bf16.msra.mxu1 %v352_v8  ;;  %v353_v10 = vld [vmem:[%s476_s3 + $0x20] sm:$0xff]   ;;  %s382_s29 = smov [#allocation2]  }
  0x11   :  { %325 = vmatprep.subr.bf16.mxu1 %v380_v1  ;;  %v348_v11 = vld [vmem:[%s474_s1 + $0x8] sm:$0xff]   ;;  %v354_v12 = vld [vmem:[%s476_s3 + $0x18] sm:$0xff]   ;;  %v349_v13 = vld [vmem:[%s474_s1] sm:$0xff]  }
  0x12   :  { %308 = vmatpush3.bf16.msra.mxu0 %v346_v7  ;;  %v355_v14 = vld [vmem:[%s476_s3 + $0x10] sm:$0xff]   ;;  %v22_v15 = vld [vmem:[%s473_s0] sm:$0xf]  ;;  %v356_v16 = vld [vmem:[%s476_s3 + $0x8] sm:$0xff]  }
  0x13   :  { %309 = vmatprep.subr.bf16.mxu0 %v380_v1  ;;  %v357_v17 = vld [vmem:[%s476_s3] sm:$0xff]   ;;  %s255_s3 = sshll.u32 %s382_s29, 4  ;;  %s256_s3 = int_to_ptr.vmem [resolvable:$true] %s255_s3 }
  0x14   :  { %326 = vmatpush3.bf16.msra.mxu1 %v353_v10  ;;  %v263_v18 = vld [vmem:[%s475_s2] ss:$0 sm:$0xff]  ;;  %s358_s2 = scalar_lea.vmem %s256_s3, 128  ;;  %p363_p1 = scmp.lt.s32.totalorder %s256_s3, %s256_s3 }
  0x15   :  { %327 = vmatprep.subr.bf16.mxu1 %v380_v1  ;;  %v272_v26 = vld [vmem:[%s477_s4] ss:$0 sm:$0xff]  ;;  %p359_p0 = scmp.ne.s32.totalorder %s256_s3, %s358_s2  ;;  %p364_p2 = scmp.lt.s32.totalorder %s358_s2, %s358_s2 }
  0x16   :  { %310 = vmatpush3.bf16.msra.mxu0 %v347_v9 }
  0x17   :  { %311 = vmatprep.subr.bf16.mxu0 %v380_v1  ;;  %p365_p3 = por %p364_p2, %p363_p1 }
  0x18   :  { %328 = vmatpush3.bf16.msra.mxu1 %v354_v12 }
  0x19   :  { %329 = vmatprep.subr.bf16.mxu1 %v380_v1  ;;  %p366_p4 = pnand %p365_p3, %p359_p0 }
  0x1a   :  { %312 = vmatpush3.bf16.msra.mxu0 %v348_v11 }
  0x1b   :  { %313 = vmatprep.subr.bf16.mxu0 %v380_v1 }
  0x1c   :  { %330 = vmatpush3.bf16.msra.mxu1 %v355_v14 }
  0x1d   :  { %331 = vmatprep.subr.bf16.mxu1 %v380_v1 }
  0x1e   :  { %314 = vmatpush3.bf16.msra.mxu0 %v349_v13 }
  0x20   :  { %332 = vmatpush3.bf16.msra.mxu1 %v356_v16 }
  0x21   :  { %316 = vmatmul.mubr.bf16.vlgmr.msra.gmra.mxu0 %v22_v15  ;;  %333 = vmatprep.subr.bf16.mxu1 %v380_v1 }
  0x24   :  { %334 = vmatpush3.bf16.msra.mxu1 %v357_v17 }
  0xe1   :  { %v128_v19 = vpop.f32.mrf.mxu0 }
  0xe2   :  { %v129_v20 = vadd.f32 %v263_v18, %v128_v19 }
  0xe3   :  { %v317_v21 = vpop.f32.mrf.mxu0 }
  0xe4   :  { %v134_v22 = vmax.f32 %v129_v20, 0.0 }
  0xe5   :  { %v131_v23 = vpop.f32.mrf.mxu0 }
  0xe6   :  { %v135_v24 = vpack.c.bf16 %v134_v22, %v134_v22 }
  0xe7   :  { %v318_v25 = vpop.f32.mrf.mxu0 }
  0xe8   :  { %336 = vmatmul.mubr.bf16.vlgmr.msra.gmra.mxu1 %v135_v24 }
 0x1a8   :  { %v241_v27 = vpop.f32.mrf.mxu1 }
 0x1a9   :  { %v242_v28 = vadd.f32 %v272_v26, %v241_v27 }
 0x1aa   :  { %v337_v29 = vpop.f32.mrf.mxu1 }
 0x1ab   :  { %v247_v30 = vmax.f32 %v242_v28, 0.0 }
 0x1ac   :  { %v244_v31 = vpop.f32.mrf.mxu1 }
 0x1ad   :  { %248 = vst [vmem:[#allocation2] sm:$0xff] %v247_v30 }
 0x1ae   :  { %v338_v32 = vpop.f32.mrf.mxu1 }
 0x1af   :  { %369 = shalt.err (!%p366_p4)
}
 0x1b0   :  { %258 = dma.vmem_to_hbm [thread:$0]  %s256_s3, 128, %s478_s5, [#allocation3]  }
 0x1b1   :  { %378 = dma.done.wait [#allocation3], 128  }
 0x1b2   :  { %379 = vsyncadd [#allocation3], 4294967168 }
 0x1b3   :  { %262 = vsyncpa [#allocation3], 1 }

</bundles_post_ra>
